<compile_context>
chip_gen: v7x
topology: tpu7x:2x2x1
jax: 0.10.0
libtpu: 0.0.40
codegen_flags: <defaults>
</compile_context>

<pallas_src>
import math

import jax
import jax.numpy as jnp
from jax.experimental import pallas as pl
from jax.experimental.pallas import tpu as pltpu


# ----------------------------- Pallas kernel -------------------------------
def _make_fused_dense_kernel(num_layers):
    """Kernel: x_ref, w0, b0, w1, b1, ..., out_ref -> fused Linear+ReLU stack."""

    def kernel(x_ref, *refs):
        out_ref = refs[-1]
        act = x_ref[...].astype(jnp.float32)          # (TM, D0) activation tile
        for l in range(num_layers):                   # static loop -> unrolled
            w = refs[2 * l][...]                      # (Din_l, Dout_l) bf16
            b = refs[2 * l + 1][...]                  # (1, Dout_l)    f32
            y = jnp.dot(act.astype(jnp.bfloat16), w,
                        preferred_element_type=jnp.float32)
            act = jnp.maximum(y + b, 0.0)             # bias + ReLU in f32
        out_ref[...] = act.astype(out_ref.dtype)

    return kernel


def fused_dense_stack(feat, params, *, max_batch_tile=256):
    """feat: (B, D0) f32; params: list of (w_t bf16 (Din, Dout), b f32 (Dout,)).

    Returns relu(...relu(feat @ w0 + b0)... @ wL + bL) as (B, D_last) f32,
    computed in a single Pallas call with the batch tiled over the grid.
    """
    B, D0 = feat.shape
    d_last = params[-1][0].shape[1]

    # Pick a batch tile: multiple of 8 (f32 sublane), capped for VMEM.
    tm = min(max(8, ((B + 7) // 8) * 8), max_batch_tile)
    B_pad = ((B + tm - 1) // tm) * tm
    if B_pad != B:
        feat = jnp.pad(feat, ((0, B_pad - B), (0, 0)))
    num_tiles = B_pad // tm

    inputs = [feat]
    in_specs = [pl.BlockSpec((tm, D0), lambda i: (i, 0))]
    flops = 0
    bytes_accessed = feat.size * 4
    for w_t, b in params:
        din, dout = w_t.shape
        inputs.append(w_t)
        inputs.append(b.reshape(1, dout).astype(jnp.float32))
        # Constant block index -> weights/biases stay resident in VMEM across
        # batch tiles (Pallas skips the re-DMA when the block index repeats).
        in_specs.append(pl.BlockSpec((din, dout), lambda i: (0, 0)))
        in_specs.append(pl.BlockSpec((1, dout), lambda i: (0, 0)))
        flops += 2 * B_pad * din * dout
        bytes_accessed += din * dout * 2 + dout * 4   # bf16 weight + f32 bias
    bytes_accessed += B_pad * d_last * 4

    out = pl.pallas_call(
        _make_fused_dense_kernel(len(params)),
        out_shape=jax.ShapeDtypeStruct((B_pad, d_last), jnp.float32),
        grid=(num_tiles,),
        in_specs=in_specs,
        out_specs=pl.BlockSpec((tm, d_last), lambda i: (i, 0)),
        compiler_params=pltpu.CompilerParams(
            dimension_semantics=("parallel",),
        ),
        cost_estimate=pl.CostEstimate(
            flops=flops, transcendentals=0, bytes_accessed=bytes_accessed,
        ),
    )(*inputs)
    return out[:B]


# --------------------------- Parameter creation -----------------------------
def init_dense_undirected_params(shapes, key):
    """Deterministic params mimicking torch.nn.Linear default init.

    Returns a list of (w_t, b) with w_t of shape (in, out) in bfloat16 and
    b of shape (out,) in float32.
    """
    assert shapes[0] == shapes[-1], "Input and output shapes must be equal"
    params = []
    for i in range(len(shapes) - 1):
        fan_in, fan_out = shapes[i], shapes[i + 1]
        key, kw, kb = jax.random.split(key, 3)
        bound = 1.0 / math.sqrt(fan_in)
        # torch weight is (out, in); store transposed (in, out), bf16 for the MXU.
        w = jax.random.uniform(kw, (fan_out, fan_in), jnp.float32, -bound, bound)
        b = jax.random.uniform(kb, (fan_out,), jnp.float32, -bound, bound)
        params.append((w.T.astype(jnp.bfloat16), b))
    return params


# ------------------------------ Forward pass --------------------------------
def dense_undirected_forward(x, params):
    """x: (b, 1, w, h) float32 -> (b, 1, w, h) float32."""
    bsz, c, w, h = x.shape
    feat = x.reshape(bsz, w * h)                  # 'b 1 w h -> b (w h)'
    feat = fused_dense_stack(feat, params)        # whole Linear+ReLU stack fused
    return feat.reshape(bsz, 1, w, h)             # 'b (w h) -> b 1 w h'


# Pure-JAX reference mirroring the kernel's bf16-weight / f32-accumulate math.
def _reference_forward(x, params):
    bsz, _, w, h = x.shape
    feat = x.reshape(bsz, w * h).astype(jnp.float32)
    for w_t, b in params:
        y = jnp.dot(feat.astype(jnp.bfloat16), w_t,
                    preferred_element_type=jnp.float32)
        feat = jnp.maximum(y + b.astype(jnp.float32), 0.0)
    return feat.reshape(bsz, 1, w, h)


if __name__ == "__main__":
    key = jax.random.PRNGKey(0)
    k_x, k_p = jax.random.split(key)

    # Small shapes consistent with the module: w = h = 16 -> w*h = 256.
    batch, w, h = 2, 16, 16
    shapes = [w * h, 128, w * h]                  # shapes[0] == shapes[-1]

    x = jax.random.normal(k_x, (batch, 1, w, h), dtype=jnp.float32)
    params = init_dense_undirected_params(shapes, k_p)

    fwd = jax.jit(dense_undirected_forward)
    out = fwd(x, params)
    out = jax.block_until_ready(out)

    ref = _reference_forward(x, params)
    assert out.shape == (batch, 1, w, h)
    assert jnp.allclose(out, ref, atol=1e-4, rtol=1e-4), (
        float(jnp.max(jnp.abs(out - ref)))
    )

    print("KERNEL_OK")
</pallas_src>

<mosaic_0001>
module attributes {stable_mosaic.version = 11 : i64} {
  func.func @kernel(%arg0: i32, %arg1: memref<8x256xf32, #tpu.memory_space<vmem>>, %arg2: memref<256x128xbf16, #tpu.memory_space<vmem>>, %arg3: memref<1x128xf32, #tpu.memory_space<vmem>>, %arg4: memref<128x256xbf16, #tpu.memory_space<vmem>>, %arg5: memref<1x256xf32, #tpu.memory_space<vmem>>, %arg6: memref<8x256xf32, #tpu.memory_space<vmem>>) attributes {dimension_semantics = [#tpu.dimension_semantics<parallel>], iteration_bounds = array<i64: 1>, scalar_prefetch = 0 : i64, scratch_operands = 0 : i64, tpu.core_type = #tpu.core_type<tc>, window_params = [{transform_indices = @transform_0, window_bounds = array<i64: 8, 256>}, {pipeline_mode = #tpu.pipeline_mode<synchronous>, transform_indices = @transform_1, window_bounds = array<i64: 256, 128>}, {pipeline_mode = #tpu.pipeline_mode<synchronous>, transform_indices = @transform_2, window_bounds = array<i64: 1, 128>}, {pipeline_mode = #tpu.pipeline_mode<synchronous>, transform_indices = @transform_3, window_bounds = array<i64: 128, 256>}, {pipeline_mode = #tpu.pipeline_mode<synchronous>, transform_indices = @transform_4, window_bounds = array<i64: 1, 256>}, {transform_indices = @transform_5, window_bounds = array<i64: 8, 256>}]} {
    %c0 = arith.constant 0 : index
    %c0_0 = arith.constant 0 : index
    %0 = vector.load %arg1[%c0, %c0_0] : memref<8x256xf32, #tpu.memory_space<vmem>>, vector<8x256xf32>
    %c0_1 = arith.constant 0 : index
    %c0_2 = arith.constant 0 : index
    %1 = vector.load %arg2[%c0_1, %c0_2] : memref<256x128xbf16, #tpu.memory_space<vmem>>, vector<256x128xbf16>
    %c0_3 = arith.constant 0 : index
    %c0_4 = arith.constant 0 : index
    %2 = vector.load %arg3[%c0_3, %c0_4] : memref<1x128xf32, #tpu.memory_space<vmem>>, vector<1x128xf32>
    %3 = arith.truncf %0 : vector<8x256xf32> to vector<8x256xbf16>
    %cst = arith.constant dense<0.000000e+00> : vector<8x128xf32>
    %4 = tpu.matmul %3, %1, %cst {dimension_numbers = #tpu.dot_dimension_numbers<[1], [0], [0], [1], [0, 0, 1, 1], [], []>} : vector<8x256xbf16>, vector<256x128xbf16>, vector<8x128xf32> -> vector<8x128xf32>
    %5 = vector.broadcast %2 : vector<1x128xf32> to vector<8x128xf32>
    %6 = arith.addf %4, %5 : vector<8x128xf32>
    %cst_5 = arith.constant 0.000000e+00 : f32
    %7 = vector.broadcast %cst_5 : f32 to vector<8x128xf32>
    %8 = arith.maximumf %6, %7 : vector<8x128xf32>
    %c0_6 = arith.constant 0 : index
    %c0_7 = arith.constant 0 : index
    %9 = vector.load %arg4[%c0_6, %c0_7] : memref<128x256xbf16, #tpu.memory_space<vmem>>, vector<128x256xbf16>
    %c0_8 = arith.constant 0 : index
    %c0_9 = arith.constant 0 : index
    %10 = vector.load %arg5[%c0_8, %c0_9] : memref<1x256xf32, #tpu.memory_space<vmem>>, vector<1x256xf32>
    %11 = arith.truncf %8 : vector<8x128xf32> to vector<8x128xbf16>
    %cst_10 = arith.constant dense<0.000000e+00> : vector<8x256xf32>
    %12 = tpu.matmul %11, %9, %cst_10 {dimension_numbers = #tpu.dot_dimension_numbers<[1], [0], [0], [1], [0, 0, 1, 1], [], []>} : vector<8x128xbf16>, vector<128x256xbf16>, vector<8x256xf32> -> vector<8x256xf32>
    %13 = vector.broadcast %10 : vector<1x256xf32> to vector<8x256xf32>
    %14 = arith.addf %12, %13 : vector<8x256xf32>
    %cst_11 = arith.constant 0.000000e+00 : f32
    %15 = vector.broadcast %cst_11 : f32 to vector<8x256xf32>
    %16 = arith.maximumf %14, %15 : vector<8x256xf32>
    %c0_12 = arith.constant 0 : index
    %c0_13 = arith.constant 0 : index
    %17 = vector.load %arg6[%c0_12, %c0_13] : memref<8x256xf32, #tpu.memory_space<vmem>>, vector<8x256xf32>
    tpu.vector_store %arg6[%c0_12, %c0_13], %16 {strides = array<i32>} : memref<8x256xf32, #tpu.memory_space<vmem>>, vector<8x256xf32>,
    return
  }
  func.func @transform_0(%arg0: i32) -> (i32, i32) {
    %c0_i32 = arith.constant 0 : i32
    %c0_i32_0 = arith.constant 0 : i32
    return %arg0, %c0_i32 : i32, i32
  }
  func.func @transform_1(%arg0: i32) -> (i32, i32) {
    %c0_i32 = arith.constant 0 : i32
    %c0_i32_0 = arith.constant 0 : i32
    %c0_i32_1 = arith.constant 0 : i32
    return %c0_i32, %c0_i32_0 : i32, i32
  }
  func.func @transform_2(%arg0: i32) -> (i32, i32) {
    %c0_i32 = arith.constant 0 : i32
    %c0_i32_0 = arith.constant 0 : i32
    %c0_i32_1 = arith.constant 0 : i32
    return %c0_i32, %c0_i32_0 : i32, i32
  }
  func.func @transform_3(%arg0: i32) -> (i32, i32) {
    %c0_i32 = arith.constant 0 : i32
    %c0_i32_0 = arith.constant 0 : i32
    %c0_i32_1 = arith.constant 0 : i32
    return %c0_i32, %c0_i32_0 : i32, i32
  }
  func.func @transform_4(%arg0: i32) -> (i32, i32) {
    %c0_i32 = arith.constant 0 : i32
    %c0_i32_0 = arith.constant 0 : i32
    %c0_i32_1 = arith.constant 0 : i32
    return %c0_i32, %c0_i32_0 : i32, i32
  }
  func.func @transform_5(%arg0: i32) -> (i32, i32) {
    %c0_i32 = arith.constant 0 : i32
    %c0_i32_0 = arith.constant 0 : i32
    return %arg0, %c0_i32 : i32, i32
  }
}

</mosaic_0001>

<bundles_post_ra>
// kernel: dense_undirected_forward.1
= control target key start
LH: loop header
LB: loop body
LE: loop exit
PB: predicated region body
PF: predicated region fallthrough
CT: control target
= control target key end

     0   :  { %10 = vsyncpa [#allocation3], 0  ;;  %s618_s0 = inlined_call_operand.vmem [shape: f32[8,256], index: 0, kind: input, shape index: {}]   ;;  %s619_s1 = inlined_call_operand.hbm [shape: bf16[256,128], index: 1, kind: input, shape index: {}]   ;;  %s620_s2 = inlined_call_operand.vmem [shape: f32[1,128], index: 2, kind: input, shape index: {}]   ;;  %s621_s3 = inlined_call_operand.hbm [shape: bf16[128,256], index: 3, kind: input, shape index: {}]   ;;  %s622_s4 = inlined_call_operand.vmem [shape: f32[1,256], index: 4, kind: input, shape index: {}]   ;;  %s623_s5 = inlined_call_operand.vmem [shape: f32[8,256], index: 5, kind: output, shape index: {}]  }
   0x1   :  { %11 = vsyncpa [#allocation5], 0  ;;  %s539_s18 = smov [#allocation2]   ;;  %s491_s22 = scalar_lea.hbm %s619_s1, 2048 }
   0x2   :  { %s19_s19 = sshll.u32 %s539_s18, 4  ;;  %p492_p0 = scmp.ne.s32.totalorder %s619_s1, %s491_s22  ;;  %s20_s19 = int_to_ptr.vmem [resolvable:$true] %s19_s19 }
   0x3   :  { %p495_p1 = scmp.lt.u32.totalorder %s491_s22, %s619_s1 }
   0x5   :  { %p497_p2 = pnand %p495_p1, %p492_p0 }
   0x7   :  { %500 = shalt.err (!%p497_p2)
}
   0x8   :  { %s501_s27 = scalar_lea.vmem %s20_s19, 2048  ;;  %p506_p4 = scmp.lt.s32.totalorder %s20_s19, %s20_s19 }
   0x9   :  { %p502_p3 = scmp.ne.s32.totalorder %s20_s19, %s501_s27  ;;  %p507_p5 = scmp.lt.s32.totalorder %s501_s27, %s501_s27 }
   0xb   :  { %p508_p6 = por %p507_p5, %p506_p4 }
   0xd   :  { %p509_p7 = pnand %p508_p6, %p502_p3 }
   0xf   :  { %512 = shalt.err (!%p509_p7)
}
  0x10   :  { %s540_s28 = smov 64   ;;  %s541_s29 = smov 4  }
  0x11   :  { %25 = dma.hbm_to_vmem [thread:$0]  %s619_s1, 2048, %s20_s19, [#allocation3], %s540_s28, %s540_s28, %s541_s29  }
  0x12   :  { %s542_s7 = smov [#allocation4]   ;;  %s513_s11 = scalar_lea.hbm %s621_s3, 2048 }
  0x13   :  { %s33_s8 = sshll.u32 %s542_s7, 4  ;;  %p514_p8 = scmp.ne.s32.totalorder %s621_s3, %s513_s11  ;;  %s34_s8 = int_to_ptr.vmem [resolvable:$true] %s33_s8 }
  0x14   :  { %p517_p9 = scmp.lt.u32.totalorder %s513_s11, %s621_s3 }
  0x16   :  { %p519_p10 = pnand %p517_p9, %p514_p8 }
  0x18   :  { %522 = shalt.err (!%p519_p10)
}
  0x19   :  { %s523_s16 = scalar_lea.vmem %s34_s8, 2048  ;;  %p528_p12 = scmp.lt.s32.totalorder %s34_s8, %s34_s8 }
  0x1a   :  { %p524_p11 = scmp.ne.s32.totalorder %s34_s8, %s523_s16  ;;  %p529_p13 = scmp.lt.s32.totalorder %s523_s16, %s523_s16 }
  0x1c   :  { %p530_p0 = por %p529_p13, %p528_p12 }
  0x1e   :  { %p531_p1 = pnand %p530_p0, %p524_p11 }
  0x20   :  { %534 = shalt.err (!%p531_p1)
}
  0x21   :  { %s543_s1 = smov 128   ;;  %s544_s17 = smov 8  }
  0x22   :  { %39 = dma.hbm_to_vmem [thread:$0]  %s621_s3, 2048, %s34_s8, [#allocation5], %s543_s1, %s543_s1, %s544_s17  }
  0x23   :  { %535 = dma.done.wait [#allocation3], 2048  }
  0x24   :  { %536 = vsyncadd [#allocation3], 4294965248 }
  0x25   :  { %537 = dma.done.wait [#allocation5], 2048  }
  0x26   :  { %538 = vsyncadd [#allocation5], 4294965248  ;;  %v451_v0 = vld [vmem:[#allocation2 + $0x40] sm:$0xff]   ;;  %v453_v2 = vld [vmem:[#allocation2 + $0x48] sm:$0xff]   ;;  %v545_v36 = vmov 0   ;;  %v248_v46 = vlaneseq }
  0x27   :  { %v452_v1 = vld [vmem:[#allocation2] sm:$0xff]   ;;  %422 = vmatprep.subr.bf16.mxu0 %v451_v0  ;;  %v454_v3 = vld [vmem:[#allocation2 + $0x8] sm:$0xff]   ;;  %v455_v4 = vld [vmem:[#allocation2 + $0x50] sm:$0xff]   ;;  %370 = vmatprep.mubr.bf16.mxu1 %v545_v36 }
  0x28   :  { %423 = vmatpush3.bf16.msra.mxu0 %v452_v1  ;;  %v456_v5 = vld [vmem:[#allocation2 + $0x10] sm:$0xff]   ;;  %v457_v6 = vld [vmem:[#allocation2 + $0x58] sm:$0xff]   ;;  %v459_v8 = vld [vmem:[#allocation2 + $0x60] sm:$0xff]   ;;  %v249_v47 = vshrl.u32 %v248_v46, 7 }
  0x29   :  { %424 = vmatprep.subr.bf16.mxu0 %v453_v2  ;;  %v458_v7 = vld [vmem:[#allocation2 + $0x18] sm:$0xff]   ;;  %v460_v9 = vld [vmem:[#allocation2 + $0x20] sm:$0xff]   ;;  %v461_v10 = vld [vmem:[#allocation2 + $0x68] sm:$0xff]  }
  0x2a   :  { %v50_v11 = vld [vmem:[%s618_s0 + $0x8] sm:$0xff]  ;;  %v470_v15 = vld [vmem:[#allocation4 + $0x14] ss:$8 sps:$4 sm:$0xff]   ;;  %v472_v18 = vld [vmem:[#allocation4 + $0x10] ss:$8 sps:$4 sm:$0xff]   ;;  %v250_v48 = vsub.s32 0, %v249_v47 }
  0x2b   :  { %v85_v12 = vpack.c.bf16 %v50_v11, %v50_v11  ;;  %v467_v13 = vld [vmem:[#allocation4 + $0x4] ss:$8 sps:$4 sm:$0xff]   ;;  %v469_v14 = vld [vmem:[#allocation4] ss:$8 sps:$4 sm:$0xff]   ;;  %v463_v17 = vld [vmem:[#allocation2 + $0x70] sm:$0xff]   ;;  %v254_v50 = vsub.s32 1, %v249_v47 }
  0x2c   :  { %425 = vmatpush3.bf16.msra.mxu0 %v454_v3  ;;  %v462_v16 = vld [vmem:[#allocation2 + $0x28] sm:$0xff]   ;;  %338 = vmatprep.subr.bf16.mxu1 %v467_v13  ;;  %v464_v20 = vld [vmem:[#allocation2 + $0x30] sm:$0xff]   ;;  %v465_v21 = vld [vmem:[#allocation2 + $0x78] sm:$0xff]  }
  0x2d   :  { %426 = vmatprep.subr.bf16.mxu0 %v455_v4  ;;  %220 = vmatprep.mubr.bf16.mxu0 %v85_v12  ;;  %v473_v19 = vld [vmem:[#allocation4 + $0x24] ss:$8 sps:$4 sm:$0xff]   ;;  %v475_v22 = vld [vmem:[#allocation4 + $0x20] ss:$8 sps:$4 sm:$0xff]   ;;  %v476_v23 = vld [vmem:[#allocation4 + $0x34] ss:$8 sps:$4 sm:$0xff]  }
  0x2e   :  { %339 = vmatpush1.bf16.msra.mxu1 %v469_v14  ;;  %v466_v24 = vld [vmem:[#allocation2 + $0x38] sm:$0xff]   ;;  %v49_v25 = vld [vmem:[%s618_s0] sm:$0xff] }
  0x2f   :  { %340 = vmatprep.subr.bf16.mxu1 %v470_v15  ;;  %v478_v26 = vld [vmem:[#allocation4 + $0x30] ss:$8 sps:$4 sm:$0xff]   ;;  %v84_v27 = vpack.c.bf16 %v49_v25, %v49_v25  ;;  %v479_v28 = vld [vmem:[#allocation4 + $0x44] ss:$8 sps:$4 sm:$0xff]   ;;  %v481_v29 = vld [vmem:[#allocation4 + $0x40] ss:$8 sps:$4 sm:$0xff]  }
  0x30   :  { %427 = vmatpush3.bf16.msra.mxu0 %v456_v5  ;;  %v482_v30 = vld [vmem:[#allocation4 + $0x54] ss:$8 sps:$4 sm:$0xff]   ;;  %v484_v31 = vld [vmem:[#allocation4 + $0x50] ss:$8 sps:$4 sm:$0xff]   ;;  %v485_v32 = vld [vmem:[#allocation4 + $0x64] ss:$8 sps:$4 sm:$0xff]  }
  0x31   :  { %428 = vmatprep.subr.bf16.mxu0 %v457_v6  ;;  %v487_v33 = vld [vmem:[#allocation4 + $0x60] ss:$8 sps:$4 sm:$0xff]   ;;  %v488_v34 = vld [vmem:[#allocation4 + $0x74] ss:$8 sps:$4 sm:$0xff]   ;;  %v490_v35 = vld [vmem:[#allocation4 + $0x70] ss:$8 sps:$4 sm:$0xff]  }
  0x32   :  { %341 = vmatpush1.bf16.msra.mxu1 %v472_v18  ;;  %v389_v38 = vld [vmem:[%s620_s2] ss:$0 sm:$0xff] }
  0x33   :  { %342 = vmatprep.subr.bf16.mxu1 %v473_v19  ;;  %v245_v49 = vld [vmem:[%s622_s4] sm:$0x3] }
  0x34   :  { %429 = vmatpush3.bf16.msra.mxu0 %v458_v7  ;;  %v251_v51 = vrot.slane %v245_v49, %v250_v48  ;;  %v255_v52 = vrot.slane %v245_v49, %v254_v50 }
  0x35   :  { %430 = vmatprep.subr.bf16.mxu0 %v459_v8 }
  0x36   :  { %343 = vmatpush1.bf16.msra.mxu1 %v475_v22 }
  0x37   :  { %344 = vmatprep.subr.bf16.mxu1 %v476_v23 }
  0x38   :  { %431 = vmatpush3.bf16.msra.mxu0 %v460_v9 }
  0x39   :  { %432 = vmatprep.subr.bf16.mxu0 %v461_v10 }
  0x3a   :  { %345 = vmatpush1.bf16.msra.mxu1 %v478_v26 }
  0x3b   :  { %346 = vmatprep.subr.bf16.mxu1 %v479_v28 }
  0x3c   :  { %433 = vmatpush3.bf16.msra.mxu0 %v462_v16 }
  0x3d   :  { %434 = vmatprep.subr.bf16.mxu0 %v463_v17 }
  0x3e   :  { %347 = vmatpush1.bf16.msra.mxu1 %v481_v29 }
  0x3f   :  { %348 = vmatprep.subr.bf16.mxu1 %v482_v30 }
  0x40   :  { %435 = vmatpush3.bf16.msra.mxu0 %v464_v20 }
  0x41   :  { %436 = vmatprep.subr.bf16.mxu0 %v465_v21 }
  0x42   :  { %349 = vmatpush1.bf16.msra.mxu1 %v484_v31 }
  0x43   :  { %350 = vmatprep.subr.bf16.mxu1 %v485_v32 }
  0x44   :  { %437 = vmatpush3.bf16.msra.mxu0 %v466_v24 }
  0x46   :  { %351 = vmatpush1.bf16.msra.mxu1 %v487_v33 }
  0x47   :  { %221 = vmatmul.mubr.bf16.vlgmr.msra.gmra.mrb[0].mxu0 %v84_v27  ;;  %352 = vmatprep.subr.bf16.mxu1 %v488_v34 }
  0x4a   :  { %353 = vmatpush1.bf16.msra.mxu1 %v490_v35 }
 0x11a   :  { %v438_v37 = vpop.f32.mrb[0].mxu0 }
 0x11b   :  { %v439_v39 = vpop.f32.mrb[1].mxu0 }
 0x11c   :  { %v440_v40 = vadd.f32 %v439_v39, %v438_v37  ;;  %v441_v41 = vpop.f32.mrb[2].mxu0 }
 0x11d   :  { %v442_v42 = vpop.f32.mrb[3].mxu0 }
 0x11e   :  { %v223_v43 = vadd.f32 %v440_v40, %v389_v38 }
 0x120   :  { %v228_v44 = vmax.f32 %v223_v43, 0.0 }
 0x122   :  { %v246_v45 = vpack.c.bf16 %v228_v44, %v228_v44 }
 0x124   :  { %371 = vmatmul.mubr.bf16.vlgmr.msra.gmra.mrb[0].mxu1 %v246_v45 }
 0x1f7   :  { %v372_v53 = vpop.f32.mrb[0].mxu1 }
 0x1f8   :  { %v373_v54 = vadd.f32 %v372_v53, %v251_v51  ;;  %v374_v55 = vpop.f32.mrb[1].mxu1 }
 0x1f9   :  { %v375_v56 = vadd.f32 %v374_v55, %v255_v52  ;;  %v376_v57 = vpop.f32.mrb[2].mxu1 }
 0x1fa   :  { %v379_v58 = vmax.f32 %v373_v54, 0.0  ;;  %v377_v59 = vpop.f32.mrb[3].mxu1 }
 0x1fb   :  { %v380_v60 = vmax.f32 %v375_v56, 0.0 }
 0x1fc   :  { %381 = vst [vmem:[%s623_s5] sm:$0xff] %v379_v58 }
 0x1fd   :  { %382 = vst [vmem:[%s623_s5 + $0x8] sm:$0xff] %v380_v60 }
 0x1fe   :  { %387 = vsyncpa [#allocation3], 1 }
 0x1ff   :  { %388 = vsyncpa [#allocation5], 1 }

</bundles_post_ra>
